<compile_context>
chip_gen: v7x
topology: tpu7x:2x2x1
jax: 0.10.0
libtpu: 0.0.40
codegen_flags: <defaults>
</compile_context>

<pallas_src>
import jax
import jax.numpy as jnp
from jax.experimental import pallas as pl
from jax.experimental.pallas import tpu as pltpu

# Gridless, whole-array-resident operands: no pipeline prologue/epilogue,
# no per-operand double buffering, no index_map lambdas.
_VMEM_SPEC = pl.BlockSpec(memory_space=pltpu.MemorySpace.VMEM)


# ------------------------------ fused kernel ---------------------------------
def _fused_net_kernel(a_ref, x_ref, p_ref,
                      w0_ref, b0_ref, w1_ref, b1_ref,
                      mw1_ref, mb1_ref, mw2_ref, mb2_ref,
                      mw3_ref, mb3_ref, mw4_ref, mb4_ref,
                      y_ref,
                      emb_ref, out_ref, loss_ref):
    a = a_ref[...]

    # --- GCNConv conv_first + relu: h1 = relu(A_hat @ (X @ W0) + b0) ---------
    # X@W first (shrink feature width before the NxN aggregation), then A@(XW).
    xw = jnp.dot(x_ref[...], w0_ref[...], preferred_element_type=jnp.float32)
    h1 = jnp.maximum(
        jnp.dot(a, xw, preferred_element_type=jnp.float32) + b0_ref[...], 0.0)

    # --- conv_layers[0] (last conv layer -> no activation) -------------------
    hw = jnp.dot(h1, w1_ref[...], preferred_element_type=jnp.float32)
    h2 = jnp.dot(a, hw, preferred_element_type=jnp.float32) + b1_ref[...]

    # --- JumpingKnowledge('max') + global_add_pool (sum pool as matmul vs P) -
    g = jnp.dot(p_ref[...], jnp.maximum(h1, h2),
                preferred_element_type=jnp.float32)
    emb_ref[...] = g                                   # out_dict['emb_T']

    # --- MLP head: 32 -> 16 -> 8 -> 4 -> 1, relu on hidden layers ------------
    h = jnp.maximum(
        jnp.dot(g, mw1_ref[...], preferred_element_type=jnp.float32)
        + mb1_ref[...], 0.0)
    h = jnp.maximum(
        jnp.dot(h, mw2_ref[...], preferred_element_type=jnp.float32)
        + mb2_ref[...], 0.0)
    h = jnp.maximum(
        jnp.dot(h, mw3_ref[...], preferred_element_type=jnp.float32)
        + mb3_ref[...], 0.0)
    out = (jnp.dot(h, mw4_ref[...], preferred_element_type=jnp.float32)
           + mb4_ref[...])
    out_ref[...] = out                                 # out_dict['perf']

    # --- MSE loss (f32 reduction) ---------------------------------------------
    diff = out - y_ref[...]
    sq = diff * diff
    ssum = jnp.sum(jnp.sum(sq, axis=1, keepdims=True), axis=0, keepdims=True)
    loss_ref[...] = ssum / float(sq.shape[0] * sq.shape[1])


# ------------------------------ model glue -----------------------------------
def net_forward(x, a_hat, pool, params, y):
    """Single fused pallas_call for the whole Net forward + MSE loss."""
    (w0, b0), (w1, b1), mlp = params
    (mw1, mb1), (mw2, mb2), (mw3, mb3), (mw4, mb4) = mlp
    g_count = pool.shape[0]
    d = w0.shape[1]
    out_dim = mw4.shape[1]

    emb, out, loss = pl.pallas_call(
        _fused_net_kernel,
        out_shape=(jax.ShapeDtypeStruct((g_count, d), jnp.float32),
                   jax.ShapeDtypeStruct((g_count, out_dim), jnp.float32),
                   jax.ShapeDtypeStruct((1, 1), jnp.float32)),
        in_specs=[_VMEM_SPEC] * 16,
        out_specs=(_VMEM_SPEC, _VMEM_SPEC, _VMEM_SPEC),
    )(a_hat, x, pool,
      w0, b0, w1, b1,
      mw1, mb1, mw2, mb2, mw3, mb3, mw4, mb4,
      y)

    out_dict = {"emb_T": emb, "perf": out}
    loss_dict = {"perf": loss[0, 0]}
    total_loss = loss[0, 0]
    gae_loss = jnp.float32(0.0)     # gae_T / gae_P disabled in this config
    return out_dict, total_loss, loss_dict, gae_loss


def net_forward_ref(x, a_hat, pool, params, y):
    (w0, b0), (w1, b1), mlp = params
    h1 = jax.nn.relu(a_hat @ (x @ w0) + b0)
    h2 = a_hat @ (h1 @ w1) + b1
    g = pool @ jnp.maximum(h1, h2)
    h = g
    for i, (w, b) in enumerate(mlp):
        h = h @ w + b
        if i < len(mlp) - 1:
            h = jax.nn.relu(h)
    return g, h, jnp.mean((h - y) ** 2)


def glorot(key, fan_in, fan_out):
    lim = jnp.sqrt(6.0 / (fan_in + fan_out))
    return jax.random.uniform(key, (fan_in, fan_out), jnp.float32, -lim, lim)


if __name__ == "__main__":
    key = jax.random.PRNGKey(0)
    N_PER_G, G = 16, 2
    N = N_PER_G * G           # 32 nodes total
    IN_CH = 16                # in_channels
    D = 32                    # FLAGS.D
    HIDDEN = [D // 2, D // 4, D // 8]  # [16, 8, 4]
    OUT_DIM = 1               # regression, MSE

    # --- synthetic graph: a ring inside each of the G graphs -----------------
    idx = jnp.arange(N)
    graph_id = idx // N_PER_G
    nxt = (idx % N_PER_G + 1) % N_PER_G + graph_id * N_PER_G
    A = jnp.zeros((N, N), jnp.float32).at[idx, nxt].set(1.0).at[nxt, idx].set(1.0)
    A = A + jnp.eye(N, dtype=jnp.float32)                  # GCN add_self_loops
    dinv = 1.0 / jnp.sqrt(A.sum(axis=1))
    a_hat = A * dinv[:, None] * dinv[None, :]              # D^-1/2 (A+I) D^-1/2
    pool = (graph_id[None, :] == jnp.arange(G)[:, None]).astype(jnp.float32)  # [G, N]

    # --- deterministic inputs / parameters ------------------------------------
    keys = jax.random.split(key, 16)
    x = jax.random.normal(keys[0], (N, IN_CH), jnp.float32)
    y = jax.random.normal(keys[1], (G, OUT_DIM), jnp.float32)  # target 'perf'

    w0, b0 = glorot(keys[2], IN_CH, D), jnp.zeros((1, D), jnp.float32)
    w1, b1 = glorot(keys[3], D, D), jnp.zeros((1, D), jnp.float32)
    dims = [D] + HIDDEN + [OUT_DIM]
    mlp_params = tuple(
        (glorot(keys[4 + i], dims[i], dims[i + 1]),
         jnp.zeros((1, dims[i + 1]), jnp.float32))
        for i in range(len(dims) - 1)
    )
    params = ((w0, b0), (w1, b1), mlp_params)

    out_dict, total_loss, loss_dict, gae_loss = net_forward(x, a_hat, pool, params, y)
    jax.block_until_ready((out_dict, total_loss))

    # lightweight correctness check vs pure-JAX reference
    ref_emb, ref_out, ref_loss = net_forward_ref(x, a_hat, pool, params, y)
    assert jnp.allclose(out_dict["emb_T"], ref_emb, rtol=1e-4, atol=1e-4)
    assert jnp.allclose(out_dict["perf"], ref_out, rtol=1e-4, atol=1e-4)
    assert jnp.allclose(total_loss, ref_loss, rtol=1e-4, atol=1e-4)

    print("KERNEL_OK")
</pallas_src>

<mosaic_0001>
module attributes {stable_mosaic.version = 11 : i64} {
  func.func @_fused_net_kernel(%arg0: memref<32x32xf32, #tpu.memory_space<vmem>>, %arg1: memref<32x16xf32, #tpu.memory_space<vmem>>, %arg2: memref<2x32xf32, #tpu.memory_space<vmem>>, %arg3: memref<16x32xf32, #tpu.memory_space<vmem>>, %arg4: memref<1x32xf32, #tpu.memory_space<vmem>>, %arg5: memref<32x32xf32, #tpu.memory_space<vmem>>, %arg6: memref<1x32xf32, #tpu.memory_space<vmem>>, %arg7: memref<32x16xf32, #tpu.memory_space<vmem>>, %arg8: memref<1x16xf32, #tpu.memory_space<vmem>>, %arg9: memref<16x8xf32, #tpu.memory_space<vmem>>, %arg10: memref<1x8xf32, #tpu.memory_space<vmem>>, %arg11: memref<8x4xf32, #tpu.memory_space<vmem>>, %arg12: memref<1x4xf32, #tpu.memory_space<vmem>>, %arg13: memref<4x1xf32, #tpu.memory_space<vmem>>, %arg14: memref<1x1xf32, #tpu.memory_space<vmem>>, %arg15: memref<2x1xf32, #tpu.memory_space<vmem>>, %arg16: memref<2x32xf32, #tpu.memory_space<vmem>>, %arg17: memref<2x1xf32, #tpu.memory_space<vmem>>, %arg18: memref<1x1xf32, #tpu.memory_space<vmem>>) attributes {dimension_semantics = [], scalar_prefetch = 0 : i64, scratch_operands = 0 : i64, tpu.core_type = #tpu.core_type<tc>} {
    %c0 = arith.constant 0 : index
    %c0_0 = arith.constant 0 : index
    %0 = vector.load %arg0[%c0, %c0_0] : memref<32x32xf32, #tpu.memory_space<vmem>>, vector<32x32xf32>
    %c0_1 = arith.constant 0 : index
    %c0_2 = arith.constant 0 : index
    %1 = vector.load %arg1[%c0_1, %c0_2] : memref<32x16xf32, #tpu.memory_space<vmem>>, vector<32x16xf32>
    %c0_3 = arith.constant 0 : index
    %c0_4 = arith.constant 0 : index
    %2 = vector.load %arg3[%c0_3, %c0_4] : memref<16x32xf32, #tpu.memory_space<vmem>>, vector<16x32xf32>
    %cst = arith.constant dense<0.000000e+00> : vector<32x32xf32>
    %3 = tpu.matmul %1, %2, %cst {dimension_numbers = #tpu.dot_dimension_numbers<[1], [0], [0], [1], [0, 0, 1, 1], [], []>} : vector<32x16xf32>, vector<16x32xf32>, vector<32x32xf32> -> vector<32x32xf32>
    %cst_5 = arith.constant dense<0.000000e+00> : vector<32x32xf32>
    %4 = tpu.matmul %0, %3, %cst_5 {dimension_numbers = #tpu.dot_dimension_numbers<[1], [0], [0], [1], [0, 0, 1, 1], [], []>} : vector<32x32xf32>, vector<32x32xf32>, vector<32x32xf32> -> vector<32x32xf32>
    %c0_6 = arith.constant 0 : index
    %c0_7 = arith.constant 0 : index
    %5 = vector.load %arg4[%c0_6, %c0_7] : memref<1x32xf32, #tpu.memory_space<vmem>>, vector<1x32xf32>
    %6 = vector.broadcast %5 : vector<1x32xf32> to vector<32x32xf32>
    %7 = arith.addf %4, %6 : vector<32x32xf32>
    %cst_8 = arith.constant 0.000000e+00 : f32
    %8 = vector.broadcast %cst_8 : f32 to vector<32x32xf32>
    %9 = arith.maximumf %7, %8 : vector<32x32xf32>
    %c0_9 = arith.constant 0 : index
    %c0_10 = arith.constant 0 : index
    %10 = vector.load %arg5[%c0_9, %c0_10] : memref<32x32xf32, #tpu.memory_space<vmem>>, vector<32x32xf32>
    %cst_11 = arith.constant dense<0.000000e+00> : vector<32x32xf32>
    %11 = tpu.matmul %9, %10, %cst_11 {dimension_numbers = #tpu.dot_dimension_numbers<[1], [0], [0], [1], [0, 0, 1, 1], [], []>} : vector<32x32xf32>, vector<32x32xf32>, vector<32x32xf32> -> vector<32x32xf32>
    %cst_12 = arith.constant dense<0.000000e+00> : vector<32x32xf32>
    %12 = tpu.matmul %0, %11, %cst_12 {dimension_numbers = #tpu.dot_dimension_numbers<[1], [0], [0], [1], [0, 0, 1, 1], [], []>} : vector<32x32xf32>, vector<32x32xf32>, vector<32x32xf32> -> vector<32x32xf32>
    %c0_13 = arith.constant 0 : index
    %c0_14 = arith.constant 0 : index
    %13 = vector.load %arg6[%c0_13, %c0_14] : memref<1x32xf32, #tpu.memory_space<vmem>>, vector<1x32xf32>
    %14 = vector.broadcast %13 : vector<1x32xf32> to vector<32x32xf32>
    %15 = arith.addf %12, %14 : vector<32x32xf32>
    %c0_15 = arith.constant 0 : index
    %c0_16 = arith.constant 0 : index
    %16 = vector.load %arg2[%c0_15, %c0_16] : memref<2x32xf32, #tpu.memory_space<vmem>>, vector<2x32xf32>
    %17 = arith.maximumf %9, %15 : vector<32x32xf32>
    %cst_17 = arith.constant dense<0.000000e+00> : vector<2x32xf32>
    %18 = tpu.matmul %16, %17, %cst_17 {dimension_numbers = #tpu.dot_dimension_numbers<[1], [0], [0], [1], [0, 0, 1, 1], [], []>} : vector<2x32xf32>, vector<32x32xf32>, vector<2x32xf32> -> vector<2x32xf32>
    %c0_18 = arith.constant 0 : index
    %c0_19 = arith.constant 0 : index
    %19 = vector.load %arg16[%c0_18, %c0_19] : memref<2x32xf32, #tpu.memory_space<vmem>>, vector<2x32xf32>
    tpu.vector_store %arg16[%c0_18, %c0_19], %18 {strides = array<i32>} : memref<2x32xf32, #tpu.memory_space<vmem>>, vector<2x32xf32>,
    %c0_20 = arith.constant 0 : index
    %c0_21 = arith.constant 0 : index
    %20 = vector.load %arg7[%c0_20, %c0_21] : memref<32x16xf32, #tpu.memory_space<vmem>>, vector<32x16xf32>
    %cst_22 = arith.constant dense<0.000000e+00> : vector<2x16xf32>
    %21 = tpu.matmul %18, %20, %cst_22 {dimension_numbers = #tpu.dot_dimension_numbers<[1], [0], [0], [1], [0, 0, 1, 1], [], []>} : vector<2x32xf32>, vector<32x16xf32>, vector<2x16xf32> -> vector<2x16xf32>
    %c0_23 = arith.constant 0 : index
    %c0_24 = arith.constant 0 : index
    %22 = vector.load %arg8[%c0_23, %c0_24] : memref<1x16xf32, #tpu.memory_space<vmem>>, vector<1x16xf32>
    %23 = vector.broadcast %22 : vector<1x16xf32> to vector<2x16xf32>
    %24 = arith.addf %21, %23 : vector<2x16xf32>
    %cst_25 = arith.constant 0.000000e+00 : f32
    %25 = vector.broadcast %cst_25 : f32 to vector<2x16xf32>
    %26 = arith.maximumf %24, %25 : vector<2x16xf32>
    %c0_26 = arith.constant 0 : index
    %c0_27 = arith.constant 0 : index
    %27 = vector.load %arg9[%c0_26, %c0_27] : memref<16x8xf32, #tpu.memory_space<vmem>>, vector<16x8xf32>
    %cst_28 = arith.constant dense<0.000000e+00> : vector<2x8xf32>
    %28 = tpu.matmul %26, %27, %cst_28 {dimension_numbers = #tpu.dot_dimension_numbers<[1], [0], [0], [1], [0, 0, 1, 1], [], []>} : vector<2x16xf32>, vector<16x8xf32>, vector<2x8xf32> -> vector<2x8xf32>
    %c0_29 = arith.constant 0 : index
    %c0_30 = arith.constant 0 : index
    %29 = vector.load %arg10[%c0_29, %c0_30] : memref<1x8xf32, #tpu.memory_space<vmem>>, vector<1x8xf32>
    %30 = vector.broadcast %29 : vector<1x8xf32> to vector<2x8xf32>
    %31 = arith.addf %28, %30 : vector<2x8xf32>
    %cst_31 = arith.constant 0.000000e+00 : f32
    %32 = vector.broadcast %cst_31 : f32 to vector<2x8xf32>
    %33 = arith.maximumf %31, %32 : vector<2x8xf32>
    %c0_32 = arith.constant 0 : index
    %c0_33 = arith.constant 0 : index
    %34 = vector.load %arg11[%c0_32, %c0_33] : memref<8x4xf32, #tpu.memory_space<vmem>>, vector<8x4xf32>
    %cst_34 = arith.constant dense<0.000000e+00> : vector<2x4xf32>
    %35 = tpu.matmul %33, %34, %cst_34 {dimension_numbers = #tpu.dot_dimension_numbers<[1], [0], [0], [1], [0, 0, 1, 1], [], []>} : vector<2x8xf32>, vector<8x4xf32>, vector<2x4xf32> -> vector<2x4xf32>
    %c0_35 = arith.constant 0 : index
    %c0_36 = arith.constant 0 : index
    %36 = vector.load %arg12[%c0_35, %c0_36] : memref<1x4xf32, #tpu.memory_space<vmem>>, vector<1x4xf32>
    %37 = vector.broadcast %36 : vector<1x4xf32> to vector<2x4xf32>
    %38 = arith.addf %35, %37 : vector<2x4xf32>
    %cst_37 = arith.constant 0.000000e+00 : f32
    %39 = vector.broadcast %cst_37 : f32 to vector<2x4xf32>
    %40 = arith.maximumf %38, %39 : vector<2x4xf32>
    %c0_38 = arith.constant 0 : index
    %c0_39 = arith.constant 0 : index
    %41 = vector.load %arg13[%c0_38, %c0_39] : memref<4x1xf32, #tpu.memory_space<vmem>>, vector<4x1xf32>
    %cst_40 = arith.constant dense<0.000000e+00> : vector<2x1xf32>
    %42 = tpu.matmul %40, %41, %cst_40 {dimension_numbers = #tpu.dot_dimension_numbers<[1], [0], [0], [1], [0, 0, 1, 1], [], []>} : vector<2x4xf32>, vector<4x1xf32>, vector<2x1xf32> -> vector<2x1xf32>
    %c0_41 = arith.constant 0 : index
    %c0_42 = arith.constant 0 : index
    %43 = vector.load %arg14[%c0_41, %c0_42] : memref<1x1xf32, #tpu.memory_space<vmem>>, vector<1x1xf32>
    %44 = vector.broadcast %43 : vector<1x1xf32> to vector<2x1xf32>
    %45 = arith.addf %42, %44 : vector<2x1xf32>
    %c0_43 = arith.constant 0 : index
    %c0_44 = arith.constant 0 : index
    %46 = vector.load %arg17[%c0_43, %c0_44] : memref<2x1xf32, #tpu.memory_space<vmem>>, vector<2x1xf32>
    tpu.vector_store %arg17[%c0_43, %c0_44], %45 {strides = array<i32>} : memref<2x1xf32, #tpu.memory_space<vmem>>, vector<2x1xf32>,
    %c0_45 = arith.constant 0 : index
    %c0_46 = arith.constant 0 : index
    %47 = vector.load %arg15[%c0_45, %c0_46] : memref<2x1xf32, #tpu.memory_space<vmem>>, vector<2x1xf32>
    %48 = arith.subf %45, %47 : vector<2x1xf32>
    %49 = arith.mulf %48, %48 : vector<2x1xf32>
    %cst_47 = arith.constant dense<0.000000e+00> : vector<2xf32>
    %50 = vector.multi_reduction <add>, %49, %cst_47 [1] : vector<2x1xf32> to vector<2xf32>
    %51 = vector.shape_cast %50 : vector<2xf32> to vector<2x1xf32>
    %cst_48 = arith.constant dense<0.000000e+00> : vector<1xf32>
    %52 = vector.multi_reduction <add>, %51, %cst_48 [0] : vector<2x1xf32> to vector<1xf32>
    %53 = vector.shape_cast %52 : vector<1xf32> to vector<1x1xf32>
    %cst_49 = arith.constant 2.000000e+00 : f32
    %54 = vector.broadcast %cst_49 : f32 to vector<1x1xf32>
    %55 = arith.divf %53, %54 : vector<1x1xf32>
    %c0_50 = arith.constant 0 : index
    %c0_51 = arith.constant 0 : index
    %56 = vector.load %arg18[%c0_50, %c0_51] : memref<1x1xf32, #tpu.memory_space<vmem>>, vector<1x1xf32>
    tpu.vector_store %arg18[%c0_50, %c0_51], %55 {strides = array<i32>} : memref<1x1xf32, #tpu.memory_space<vmem>>, vector<1x1xf32>,
    return
  }
}

</mosaic_0001>

<bundles_post_ra>
// kernel: tpu_custom_call.1
= control target key start
LH: loop header
LB: loop body
LE: loop exit
PB: predicated region body
PF: predicated region fallthrough
CT: control target
= control target key end

     0   :  { %s1439_s0 = inlined_call_operand.vmem [shape: f32[32,32], index: 0, kind: input, shape index: {}]   ;;  %s1440_s1 = inlined_call_operand.vmem [shape: f32[32,16], index: 1, kind: input, shape index: {}]   ;;  %s1441_s2 = inlined_call_operand.vmem [shape: f32[2,32], index: 2, kind: input, shape index: {}]   ;;  %s1442_s3 = inlined_call_operand.vmem [shape: f32[16,32], index: 3, kind: input, shape index: {}]   ;;  %s1443_s4 = inlined_call_operand.vmem [shape: f32[1,32], index: 4, kind: input, shape index: {}]   ;;  %s1444_s5 = inlined_call_operand.vmem [shape: f32[32,32], index: 5, kind: input, shape index: {}]   ;;  %s1445_s6 = inlined_call_operand.vmem [shape: f32[1,32], index: 6, kind: input, shape index: {}]   ;;  %s1446_s7 = inlined_call_operand.vmem [shape: f32[32,16], index: 7, kind: input, shape index: {}]   ;;  %s1447_s8 = inlined_call_operand.vmem [shape: f32[1,16], index: 8, kind: input, shape index: {}]   ;;  %s1448_s9 = inlined_call_operand.vmem [shape: f32[16,8], index: 9, kind: input, shape index: {}]   ;;  %s1449_s10 = inlined_call_operand.vmem [shape: f32[1,8], index: 10, kind: input, shape index: {}]   ;;  %s1450_s11 = inlined_call_operand.vmem [shape: f32[8,4], index: 11, kind: input, shape index: {}]   ;;  %s1451_s12 = inlined_call_operand.vmem [shape: f32[1,4], index: 12, kind: input, shape index: {}]   ;;  %s1452_s13 = inlined_call_operand.vmem [shape: f32[4,1], index: 13, kind: input, shape index: {}]   ;;  %s1453_s14 = inlined_call_operand.<no memory space> [shape: f32[1,1], index: 14, kind: input, shape index: {}]   ;;  %s1454_s15 = inlined_call_operand.vmem [shape: f32[2,1], index: 15, kind: input, shape index: {}]   ;;  %s1455_s16 = inlined_call_operand.hbm [shape: f32[2,32], index: 16, kind: output, shape index: {0}]   ;;  %s1456_s17 = inlined_call_operand.vmem [shape: f32[2,1], index: 17, kind: output, shape index: {1}]   ;;  %s1457_s18 = inlined_call_operand.hbm [shape: f32[1,1], index: 18, kind: output, shape index: {2}]  }
   0x1   :  { %1460 = sst [smem:[#allocation9_spill]] %s1439_s0  ;;  %v24_v0 = vstv %s1453_s14 }
   0x2   :  { %1461 = sst [smem:[#allocation10_spill]] %s1440_s1  ;;  %25 = vst [vmem:[#allocation2] sm:$0x1] %v24_v0 }
   0x3   :  { %1462 = sst [smem:[#allocation11_spill]] %s1441_s2 }
   0x4   :  { %26 = vsyncpa [#allocation4], 0  ;;  %v68_v1 = vld [vmem:[%s1442_s3] sm:$0xff]  ;;  %v69_v2 = vld [vmem:[%s1442_s3 + $0x8] sm:$0xff]  ;;  %s1463_s21 = sld [smem:[#allocation10_spill]]  ;;  %vm70_vm0 = vcmask 130048  }
   0x5   :  { %v1102_v4 = vpack.c.bf16 %v69_v2, %v68_v1 }
   0xa   :  { %v64_v3 = vld [vmem:[%s1463_s21] sm:$0xff] }
   0xb   :  { %1015 = vmatprep.mubr.msk.f32.mxu0 %vm70_vm0, %v64_v3 }
   0xc   :  { %27 = vsyncpa [#allocation6], 0  ;;  %1103 = vmatprep.subr.bf16.mxu0 %v1102_v4  ;;  %v65_v5 = vld [vmem:[%s1463_s21 + $0x8] sm:$0xff]  ;;  %v66_v6 = vld [vmem:[%s1463_s21 + $0x10] sm:$0xff]  ;;  %s1464_s27 = sld [smem:[#allocation9_spill]]  ;;  %vm175_vm1 = vcmask 261120  }
   0xd   :  { %1105 = vmatpush3.bf16.msra.mxu0 %v1102_v4  ;;  %v67_v7 = vld [vmem:[%s1463_s21 + $0x18] sm:$0xff]  ;;  %v277_v9 = vld [vmem:[%s1444_s5] sm:$0xff]  ;;  %v278_v10 = vld [vmem:[%s1444_s5 + $0x8] sm:$0xff]  ;;  %v1198_v43 = vmov 0.0|0.0   ;;  %vm1199_vm2 = vmmov 0   ;;  %v1200_v44 = vmov 0.0  }
   0xe   :  { %v1114_v11 = vpack.c.bf16 %v278_v10, %v277_v9  ;;  %v279_v21 = vld [vmem:[%s1444_s5 + $0x10] sm:$0xff]  ;;  %v280_v22 = vld [vmem:[%s1444_s5 + $0x18] sm:$0xff]  ;;  %v940_v24 = vld [vmem:[%s1443_s4] ss:$0 sm:$0xff]  ;;  %vm548_vm3 = vcmask 254976   ;;  %vm726_vm4 = vcmask 64512  }
   0xf   :  { %v1118_v23 = vpack.c.bf16 %v280_v22, %v279_v21  ;;  %v550_v45 = vld [vmem:[%s1446_s7] sm:$0xff]  ;;  %v551_v46 = vld [vmem:[%s1446_s7 + $0x8] sm:$0xff]  ;;  %v552_v47 = vld [vmem:[%s1446_s7 + $0x10] sm:$0xff]  ;;  %vm813_vm5 = vcmask 1043456   ;;  %vm809_vm6 = vcmask 31744  }
  0x10   :  { %1016 = vmatmul.mubr.msk.f32.vlgmr.msra.gmra.mrb[0].mxu0 %vm70_vm0, %v65_v5  ;;  %1115 = vmatprep.subr.bf16.mxu0 %v1114_v11  ;;  %v1137_v48 = vpack.c.bf16 %v551_v46, %v550_v45  ;;  %v553_v49 = vld [vmem:[%s1446_s7 + $0x18] sm:$0xff]  ;;  %v949_v51 = vld [vmem:[%s1445_s6] ss:$0 sm:$0xff]  ;;  %s1465_s6 = sld [smem:[#allocation11_spill]] }
  0x11   :  { %1018 = vmatprep.mubr.msk.f32.mxu0 %vm70_vm0, %v66_v6  ;;  %1117 = vmatpush3.bf16.msra.mxu0 %v1114_v11  ;;  %v1140_v50 = vpack.c.bf16 %v553_v49, %v552_v47  ;;  %v635_v5 = vld [vmem:[%s1448_s9] sm:$0xff]  ;;  %v636_v6 = vld [vmem:[%s1448_s9 + $0x8] sm:$0xff] }
  0x12   :  { %v60_v8 = vld [vmem:[%s1464_s27] sm:$0xff]  ;;  %v61_v18 = vld [vmem:[%s1464_s27 + $0x8] sm:$0xff]  ;;  %v62_v19 = vld [vmem:[%s1464_s27 + $0x10] sm:$0xff]  ;;  %1119 = vmatprep.subr.bf16.mxu0 %v1118_v23 }
  0x13   :  { %1029 = vmatprep.mubr.msk.f32.mxu1 %vm175_vm1, %v60_v8  ;;  %v63_v20 = vld [vmem:[%s1464_s27 + $0x18] sm:$0xff] }
  0x14   :  { %1019 = vmatmul.mubr.msk.f32.gmra.mrb[2].mxu0 %vm70_vm0, %v67_v7  ;;  %v1143_v7 = vpack.c.bf16 %v636_v6, %v635_v5 }
  0x15   :  { %1121 = vmatpush3.bf16.msra.mxu0 %v1118_v23 }
  0x16   :  { %1130 = vmatprep.subr.bf16.mxu0 %v1198_v43  ;;  %v470_v2 = vld [vmem:[%s1465_s6] sm:$0x3] }
  0xe3   :  { %v1017_v12 = vpop.f32.mrb[0].mxu0 }
  0xe4   :  { %v149_v13 = vpop.f32.mrb[1].mxu0 }
  0xe5   :  { %v1106_v14 = vpack.c.bf16 %v1017_v12, %v149_v13  ;;  %v718_v13 = vld [vmem:[%s1450_s11] sm:$0xff] }
  0xe7   :  { %v1020_v15 = vpop.f32.mrb[2].mxu0  ;;  %1107 = vmatprep.subr.bf16.mxu1 %v1106_v14 }
  0xe8   :  { %v159_v16 = vpop.f32.mrb[3].mxu0  ;;  %1109 = vmatpush3.bf16.msra.mxu1 %v1106_v14  ;;  %v957_v14 = vld [vmem:[%s1449_s10] ss:$0 sm:$0xff]  ;;  %s1201_s10 = smov [#allocation3]  }
  0xe9   :  { %v1110_v17 = vpack.c.bf16 %v1020_v15, %v159_v16  ;;  %s910_s11 = sshll.u32 %s1201_s10, 4  ;;  %s911_s11 = int_to_ptr.vmem [resolvable:$true] %s910_s11 }
  0xea   :  { %s1150_s29 = scalar_lea.vmem %s911_s11, 32  ;;  %p1155_p1 = scmp.lt.s32.totalorder %s911_s11, %s911_s11 }
  0xeb   :  { %1111 = vmatprep.subr.bf16.mxu1 %v1110_v17  ;;  %p1151_p0 = scmp.ne.s32.totalorder %s911_s11, %s1150_s29  ;;  %p1156_p2 = scmp.lt.s32.totalorder %s1150_s29, %s1150_s29 }
  0xec   :  { %1113 = vmatpush3.bf16.msra.mxu1 %v1110_v17 }
  0xed   :  { %p1157_p3 = por %p1156_p2, %p1155_p1 }
  0xef   :  { %1030 = vmatmul.mubr.msk.f32.vlgmr.msra.gmra.mrb[0].mxu1 %vm175_vm1, %v61_v18  ;;  %p1158_p4 = pnand %p1157_p3, %p1151_p0 }
  0xf0   :  { %1032 = vmatprep.mubr.msk.f32.mxu1 %vm175_vm1, %v62_v19 }
  0xf3   :  { %1033 = vmatmul.mubr.msk.f32.gmra.mrb[2].mxu1 %vm175_vm1, %v63_v20 }
  0xf4   :  { %1057 = vmatprep.mubr.msk.f32.mxu1 %vm175_vm1, %v60_v8  ;;  %v955_v8 = vld [vmem:[%s1447_s8] ss:$0 sm:$0xff] }
 0x1c2   :  { %v1031_v25 = vpop.f32.mrb[0].mxu1 }
 0x1c3   :  { %v260_v26 = vadd.f32 %v1031_v25, %v940_v24  ;;  %v254_v27 = vpop.f32.mrb[1].mxu1 }
 0x1c4   :  { %v255_v28 = vadd.f32 %v940_v24, %v254_v27 }
 0x1c5   :  { %v274_v31 = vmax.f32 %v260_v26, 0.0 }
 0x1c6   :  { %v273_v29 = vmax.f32 %v255_v28, 0.0  ;;  %v1034_v30 = vpop.f32.mrb[2].mxu1 }
 0x1c7   :  { %v270_v32 = vadd.f32 %v1034_v30, %v940_v24  ;;  %v264_v33 = vpop.f32.mrb[3].mxu1 }
 0x1c8   :  { %v265_v34 = vadd.f32 %v940_v24, %v264_v33  ;;  %1043 = vmatprep.mubr.msk.f32.mxu0 %vm175_vm1, %v273_v29 }
 0x1c9   :  { %1044 = vmatmul.mubr.msk.f32.vlgmr.msra.gmra.mrb[4].mxu0 %vm175_vm1, %v274_v31  ;;  %v276_v36 = vmax.f32 %v270_v32, 0.0 }
 0x1ca   :  { %v275_v35 = vmax.f32 %v265_v34, 0.0 }
 0x1cc   :  { %1046 = vmatprep.mubr.msk.f32.mxu0 %vm175_vm1, %v275_v35 }
 0x1cd   :  { %1047 = vmatmul.mubr.msk.f32.gmra.mrb[6].mxu0 %vm175_vm1, %v276_v36 }
 0x1ce   :  { %1071 = vmatprep.mubr.msk.f32.mxu0 %vm1199_vm2, %v1200_v44 }
 0x29c   :  { %v1045_v37 = vpop.f32.mrb[4].mxu0 }
 0x29d   :  { %v359_v38 = vpop.f32.mrb[5].mxu0 }
 0x29e   :  { %v1122_v39 = vpack.c.bf16 %v1045_v37, %v359_v38 }
 0x2a0   :  { %v1048_v40 = vpop.f32.mrb[6].mxu0  ;;  %1123 = vmatprep.subr.bf16.mxu1 %v1122_v39 }
 0x2a1   :  { %v369_v41 = vpop.f32.mrb[7].mxu0  ;;  %1125 = vmatpush3.bf16.msra.mxu1 %v1122_v39 }
 0x2a2   :  { %v1126_v42 = vpack.c.bf16 %v1048_v40, %v369_v41 }
 0x2a4   :  { %1127 = vmatprep.subr.bf16.mxu1 %v1126_v42 }
 0x2a5   :  { %1129 = vmatpush3.bf16.msra.mxu1 %v1126_v42 }
 0x2a6   :  { %1136 = vmatprep.subr.bf16.mxu1 %v1198_v43 }
 0x2a8   :  { %1058 = vmatmul.mubr.msk.f32.vlgmr.msra.gmra.mrb[4].mxu1 %vm175_vm1, %v61_v18 }
 0x2a9   :  { %1060 = vmatprep.mubr.msk.f32.mxu1 %vm175_vm1, %v62_v19  ;;  %1138 = vmatpush3.bf16.msra.mxu1 %v1137_v48  ;;  %v801_v19 = vld [vmem:[%s1452_s13] sm:$0xf] }
 0x2aa   :  { %1139 = vmatprep.subr.bf16.mxu1 %v1198_v43 }
 0x2ac   :  { %1061 = vmatmul.mubr.msk.f32.gmra.mrb[6].mxu1 %vm175_vm1, %v63_v20  ;;  %v959_v20 = vld [vmem:[%s1451_s12] ss:$0 sm:$0xff] }
 0x2ad   :  { %1082 = vmatprep.mubr.msk.f32.mxu1 %vm1199_vm2, %v1200_v44  ;;  %1141 = vmatpush3.bf16.msra.mxu1 %v1140_v50 }
 0x2ae   :  { %1097 = vmatprep.subr.mxu1 %v1200_v44 }
 0x37b   :  { %v1059_v52 = vpop.f32.mrb[4].mxu1 }
 0x37c   :  { %v457_v53 = vadd.f32 %v1059_v52, %v949_v51  ;;  %v451_v54 = vpop.f32.mrb[5].mxu1 }
 0x37d   :  { %v452_v55 = vadd.f32 %v949_v51, %v451_v54 }
 0x37e   :  { %v472_v56 = vmax.f32 %v274_v31, %v457_v53 }
 0x37f   :  { %v471_v57 = vmax.f32 %v273_v29, %v452_v55  ;;  %v1062_v58 = vpop.f32.mrb[6].mxu1 }
 0x380   :  { %v467_v59 = vadd.f32 %v1062_v58, %v949_v51  ;;  %v461_v60 = vpop.f32.mrb[7].mxu1 }
 0x381   :  { %v1131_v61 = vpack.c.bf16 %v472_v56, %v471_v57  ;;  %v462_v62 = vadd.f32 %v949_v51, %v461_v60 }
 0x382   :  { %v474_v63 = vmax.f32 %v276_v36, %v467_v59 }
 0x383   :  { %v473_v0 = vmax.f32 %v275_v35, %v462_v62  ;;  %1132 = vmatpush3.bf16.msra.mxu0 %v1131_v61 }
 0x384   :  { %1133 = vmatprep.subr.bf16.mxu0 %v1198_v43 }
 0x385   :  { %v1134_v1 = vpack.c.bf16 %v474_v63, %v473_v0 }
 0x387   :  { %1135 = vmatpush3.bf16.msra.mxu0 %v1134_v1 }
 0x388   :  { %1142 = vmatprep.subr.bf16.mxu0 %v1198_v43 }
 0x38a   :  { %1072 = vmatmul.mubr.msk.f32.vlgmr.msra.gmra.mrb[8].mxu0 %vm175_vm1, %v470_v2 }
 0x38b   :  { %1089 = vmatprep.mubr.msk.f32.mxu0 %vm1199_vm2, %v1200_v44  ;;  %1144 = vmatpush3.bf16.msra.mxu0 %v1143_v7 }
 0x38c   :  { %1092 = vmatprep.subr.mxu0 %v1200_v44 }
 0x45d   :  { %v544_v3 = vpop.f32.mrb[8].mxu0 }
 0x45e   :  { %v1073_v4 = vpop.f32.mrb[9].mxu0  ;;  %1083 = vmatmul.mubr.msk.f32.vlgmr.msra.gmra.mrb[8].mxu1 %vm175_vm1, %v544_v3  ;;  %549 = vst.msk [vmem:[#allocation3] sm:$0x3] %vm548_vm3, %v544_v3 }
 0x45f   :  { %1099 = vmatprep.mubr.msk.f32.mxu1 %vm1199_vm2, %v1200_v44  ;;  %1098 = vmatpush3.msk.msra.mxu1 %vm813_vm5, %v801_v19 }
 0x531   :  { %v630_v9 = vpop.f32.mrb[8].mxu1 }
 0x532   :  { %v631_v10 = vadd.f32 %v955_v8, %v630_v9  ;;  %v1084_v11 = vpop.f32.mrb[9].mxu1 }
 0x534   :  { %v634_v12 = vmax.f32 %v631_v10, 0.0 }
 0x536   :  { %1090 = vmatmul.mubr.msk.f32.vlgmr.msra.gmra.mrb[10].mxu0 %vm70_vm0, %v634_v12 }
 0x537   :  { %1094 = vmatprep.mubr.msk.f32.mxu0 %vm1199_vm2, %v1200_v44  ;;  %1093 = vmatpush3.msra.mxu0 %v718_v13 }
 0x609   :  { %v713_v15 = vpop.f32.mrb[10].mxu0 }
 0x60a   :  { %v714_v16 = vadd.f32 %v957_v14, %v713_v15  ;;  %v1091_v17 = vpop.f32.mrb[11].mxu0 }
 0x60c   :  { %v717_v18 = vmax.f32 %v714_v16, 0.0 }
 0x60e   :  { %1095 = vmatmul.mubr.msk.f32.vlgmr.msra.gmra.mrb[12].mxu0 %vm726_vm4, %v717_v18 }
 0x6e1   :  { %v796_v21 = vpop.f32.mrb[12].mxu0 }
 0x6e2   :  { %v797_v22 = vadd.f32 %v959_v20, %v796_v21  ;;  %v1096_v23 = vpop.f32.mrb[13].mxu0 }
 0x6e4   :  { %v800_v24 = vmax.f32 %v797_v22, 0.0 }
 0x6e6   :  { %1100 = vmatmul.mubr.msk.f32.vlgmr.msra.gmra.mrb[10].mxu1 %vm809_vm6, %v800_v24 }
 0x6e7   :  { %1161 = shalt.err (!%p1158_p4)
}
 0x6e8   :  { %s1162_s12 = scalar_lea.hbm %s1455_s16, 32 }
 0x6e9   :  { %p1163_p5 = scmp.ne.s32.totalorder %s1455_s16, %s1162_s12  ;;  %p1166_p6 = scmp.lt.u32.totalorder %s1162_s12, %s1455_s16 }
 0x6eb   :  { %p1168_p7 = pnand %p1166_p6, %p1163_p5 }
 0x6ed   :  { %1171 = shalt.err (!%p1168_p7)
}
 0x6ee   :  { %913 = dma.vmem_to_hbm [thread:$0]  %s911_s11, 32, %s1455_s16, [#allocation4]   ;;  %v961_v25 = vld [vmem:[#allocation2] ss:$0 sm:$0xff]  ;;  %vm887_vm7 = vcmask 1024   ;;  %vm902_vm8 = vcmask 0  }
 0x6ef   :  { %v889_v27 = vld [vmem:[%s1454_s15] sm:$0x3]  ;;  %s1202_s16 = smov [#allocation5]  }
 0x6f0   :  { %s922_s23 = sshll.u32 %s1202_s16, 4  ;;  %s923_s23 = int_to_ptr.vmem [resolvable:$true] %s922_s23 }
 0x6f1   :  { %s1172_s15 = scalar_lea.vmem %s923_s23, 16  ;;  %s1176_s3 = scalar_lea.vmem %s923_s23, 32 }
 0x6f2   :  { %p1173_p8 = scmp.ne.s32.totalorder %s923_s23, %s1172_s15  ;;  %p1177_p9 = scmp.lt.s32.totalorder %s923_s23, %s923_s23 }
 0x6f3   :  { %p1178_p10 = scmp.lt.s32.totalorder %s1176_s3, %s1172_s15 }
 0x6f5   :  { %p1179_p11 = por %p1178_p10, %p1177_p9 }
 0x6f7   :  { %p1180_p12 = pnand %p1179_p11, %p1173_p8 }
 0x7b9   :  { %v883_v26 = vpop.f32.mrb[10].mxu1 }
 0x7ba   :  { %v884_v28 = vadd.f32 %v961_v25, %v883_v26  ;;  %v1101_v29 = vpop.f32.mrb[11].mxu1 }
 0x7bc   :  { %888 = vst.msk [vmem:[%s1456_s17] sm:$0x3] %vm887_vm7, %v884_v28  ;;  %v890_v30 = vsub.f32 %v884_v28, %v889_v27 }
 0x7be   :  { %v891_v31 = vmul.f32 %v890_v30, %v890_v30 }
 0x7c0   :  { %v893_v32 = vsel %vm887_vm7, %v891_v31, 0.0 }
 0x7c1   :  { %v894_v33 = vrot.slane %v893_v32, 4 }
 0x7c3   :  { %v895_v34 = vadd.f32 %v894_v33, %v893_v32 }
 0x7c5   :  { %v896_v35 = vrot.slane %v895_v34, 2 }
 0x7c7   :  { %v897_v36 = vadd.f32 %v896_v35, %v895_v34 }
 0x7c9   :  { %v898_v37 = vrot.slane %v897_v36, 1 }
 0x7cb   :  { %v899_v38 = vadd.f32 %v898_v37, %v897_v36 }
 0x7cd   :  { %v901_v39 = vmul.f32 0.5, %v899_v38 }
 0x7cf   :  { %903 = vst.msk [vmem:[#allocation5] sm:$0x1] %vm902_vm8, %v901_v39 }
 0x7d0   :  { %1183 = shalt.err (!%p1180_p12)
}
 0x7d1   :  { %s1184_s25 = scalar_lea.hbm %s1457_s18, 16 }
 0x7d2   :  { %p1185_p13 = scmp.ne.s32.totalorder %s1457_s18, %s1184_s25  ;;  %p1188_p0 = scmp.lt.u32.totalorder %s1184_s25, %s1457_s18 }
 0x7d4   :  { %p1190_p1 = pnand %p1188_p0, %p1185_p13 }
 0x7d6   :  { %1193 = shalt.err (!%p1190_p1)
}
 0x7d7   :  { %925 = dma.vmem_to_hbm [thread:$0]  %s923_s23, 16, %s1457_s18, [#allocation6]  }
 0x7d8   :  { %1194 = dma.done.wait [#allocation4], 32  }
 0x7d9   :  { %1195 = vsyncadd [#allocation4], 4294967264 }
 0x7da   :  { %1196 = dma.done.wait [#allocation6], 16  }
 0x7db   :  { %1197 = vsyncadd [#allocation6], 4294967280 }
 0x7dc   :  { %934 = vsyncpa [#allocation4], 1 }
 0x7dd   :  { %935 = vsyncpa [#allocation6], 1 }

</bundles_post_ra>
